<compile_context>
chip_gen: v7x
topology: tpu7x:2x2x1
jax: 0.10.0
libtpu: 0.0.40
codegen_flags: <defaults>
</compile_context>

<pallas_src>
import jax
import jax.numpy as jnp
from jax import lax
from jax.experimental import pallas as pl
from jax.experimental.pallas import tpu as pltpu


def _linear_kernel(x_ref, w_ref, b_ref, o_ref):
    # x_ref: (TB, K)        -- batch tile, K on the lane axis
    # w_ref: (OUT_PAD, K)   -- weight kept in PyTorch (out, in) layout
    # b_ref: (1, OUT_PAD)
    # o_ref: (TB, OUT_PAD)  -- lane-dense (padded to 128) output slab
    acc = lax.dot_general(
        x_ref[...], w_ref[...],
        dimension_numbers=(((1,), (1,)), ((), ())),   # contract K with K
        preferred_element_type=jnp.float32,
    )
    # f32 epilogue (bias add) then cast to output dtype.
    o_ref[...] = (acc + b_ref[...]).astype(o_ref.dtype)


def classifier_forward(x, weight, bias, need_hidden=True):
    """x: (B, 192); weight: (out_size, 192); bias: (out_size,)."""
    B, K = x.shape
    out_size = weight.shape[0]

    # Pad the output channel dimension up to a multiple of 128 lanes.
    out_pad = ((out_size + 127) // 128) * 128
    w_pad = jnp.zeros((out_pad, K), weight.dtype).at[:out_size, :].set(weight)
    b_pad = jnp.zeros((1, out_pad), bias.dtype).at[0, :out_size].set(bias)

    # Batch tiling: TB rows per grid step; weight/bias stay resident.
    TB = B if B <= 512 else 512          # 512 % 8 == 0; TB==B handles small B
    grid = (pl.cdiv(B, TB),)

    cost = pl.CostEstimate(
        flops=2 * B * K * out_size,
        transcendentals=0,
        bytes_accessed=4 * (B * K + K * out_size + B * out_size),
    )

    c_pad = pl.pallas_call(
        _linear_kernel,
        out_shape=jax.ShapeDtypeStruct((B, out_pad), x.dtype),
        grid=grid,
        in_specs=[
            pl.BlockSpec((TB, K), lambda i: (i, 0)),        # x: tiled over batch
            pl.BlockSpec((out_pad, K), lambda i: (0, 0)),   # weight: resident
            pl.BlockSpec((1, out_pad), lambda i: (0, 0)),   # bias:   resident
        ],
        out_specs=pl.BlockSpec((TB, out_pad), lambda i: (i, 0)),
        compiler_params=pltpu.CompilerParams(
            dimension_semantics=("parallel",),
            vmem_limit_bytes=64 * 1024 * 1024,
        ),
        cost_estimate=cost,
    )(x, w_pad, b_pad)

    c = c_pad[:, :out_size]
    if not need_hidden:
        return c
    return (x, c)


if __name__ == "__main__":
    key = jax.random.PRNGKey(0)
    kx, kw, kb = jax.random.split(key, 3)

    B, IN, OUT = 8, 192, 6
    x = jax.random.normal(kx, (B, IN), dtype=jnp.float32)
    # Deterministic init mimicking nn.Linear default (uniform in +/- 1/sqrt(fan_in))
    bound = 1.0 / (IN ** 0.5)
    weight = jax.random.uniform(kw, (OUT, IN), minval=-bound, maxval=bound,
                                dtype=jnp.float32)
    bias = jax.random.uniform(kb, (OUT,), minval=-bound, maxval=bound,
                              dtype=jnp.float32)

    hidden, c = classifier_forward(x, weight, bias, need_hidden=True)
    jax.block_until_ready(c)

    # Reference check against plain JAX
    c_ref = x @ weight.T + bias
    assert jnp.allclose(c, c_ref, atol=1e-5, rtol=1e-5), "mismatch vs reference"
    assert hidden.shape == (B, IN) and c.shape == (B, OUT)

    print("KERNEL_OK")
</pallas_src>

<mosaic_0001>
module attributes {stable_mosaic.version = 11 : i64} {
  func.func @_linear_kernel(%arg0: i32, %arg1: memref<8x192xf32, #tpu.memory_space<vmem>>, %arg2: memref<128x192xf32, #tpu.memory_space<vmem>>, %arg3: memref<1x128xf32, #tpu.memory_space<vmem>>, %arg4: memref<8x128xf32, #tpu.memory_space<vmem>>) attributes {dimension_semantics = [#tpu.dimension_semantics<parallel>], iteration_bounds = array<i64: 1>, scalar_prefetch = 0 : i64, scratch_operands = 0 : i64, tpu.core_type = #tpu.core_type<tc>, window_params = [{transform_indices = @transform_0, window_bounds = array<i64: 8, 192>}, {pipeline_mode = #tpu.pipeline_mode<synchronous>, transform_indices = @transform_1, window_bounds = array<i64: 128, 192>}, {pipeline_mode = #tpu.pipeline_mode<synchronous>, transform_indices = @transform_2, window_bounds = array<i64: 1, 128>}, {transform_indices = @transform_3, window_bounds = array<i64: 8, 128>}]} {
    %c0 = arith.constant 0 : index
    %c0_0 = arith.constant 0 : index
    %0 = vector.load %arg1[%c0, %c0_0] : memref<8x192xf32, #tpu.memory_space<vmem>>, vector<8x192xf32>
    %c0_1 = arith.constant 0 : index
    %c0_2 = arith.constant 0 : index
    %1 = vector.load %arg2[%c0_1, %c0_2] : memref<128x192xf32, #tpu.memory_space<vmem>>, vector<128x192xf32>
    %cst = arith.constant dense<0.000000e+00> : vector<8x128xf32>
    %2 = tpu.matmul %0, %1, %cst {dimension_numbers = #tpu.dot_dimension_numbers<[1], [1], [0], [0], [0, 0, 1, 0], [], []>} : vector<8x192xf32>, vector<128x192xf32>, vector<8x128xf32> -> vector<8x128xf32>
    %c0_3 = arith.constant 0 : index
    %c0_4 = arith.constant 0 : index
    %3 = vector.load %arg3[%c0_3, %c0_4] : memref<1x128xf32, #tpu.memory_space<vmem>>, vector<1x128xf32>
    %4 = vector.broadcast %3 : vector<1x128xf32> to vector<8x128xf32>
    %5 = arith.addf %2, %4 : vector<8x128xf32>
    %c0_5 = arith.constant 0 : index
    %c0_6 = arith.constant 0 : index
    %6 = vector.load %arg4[%c0_5, %c0_6] : memref<8x128xf32, #tpu.memory_space<vmem>>, vector<8x128xf32>
    tpu.vector_store %arg4[%c0_5, %c0_6], %5 {strides = array<i32>} : memref<8x128xf32, #tpu.memory_space<vmem>>, vector<8x128xf32>,
    return
  }
  func.func @transform_0(%arg0: i32) -> (i32, i32) {
    %c0_i32 = arith.constant 0 : i32
    %c0_i32_0 = arith.constant 0 : i32
    return %arg0, %c0_i32 : i32, i32
  }
  func.func @transform_1(%arg0: i32) -> (i32, i32) {
    %c0_i32 = arith.constant 0 : i32
    %c0_i32_0 = arith.constant 0 : i32
    %c0_i32_1 = arith.constant 0 : i32
    return %c0_i32, %c0_i32_0 : i32, i32
  }
  func.func @transform_2(%arg0: i32) -> (i32, i32) {
    %c0_i32 = arith.constant 0 : i32
    %c0_i32_0 = arith.constant 0 : i32
    %c0_i32_1 = arith.constant 0 : i32
    return %c0_i32, %c0_i32_0 : i32, i32
  }
  func.func @transform_3(%arg0: i32) -> (i32, i32) {
    %c0_i32 = arith.constant 0 : i32
    %c0_i32_0 = arith.constant 0 : i32
    return %arg0, %c0_i32 : i32, i32
  }
}

</mosaic_0001>

<bundles_post_ra>
// kernel: tpu_custom_call.1
= control target key start
LH: loop header
LB: loop body
LE: loop exit
PB: predicated region body
PF: predicated region fallthrough
CT: control target
= control target key end

     0   :  { %8 = vsyncpa [#allocation3], 0  ;;  %s487_s0 = inlined_call_operand.hbm [shape: f32[8,192], index: 0, kind: input, shape index: {}]   ;;  %s488_s1 = inlined_call_operand.hbm [shape: f32[128,192], index: 1, kind: input, shape index: {}]   ;;  %s489_s2 = inlined_call_operand.hbm [shape: f32[1,128], index: 2, kind: input, shape index: {}]   ;;  %s490_s3 = inlined_call_operand.hbm [shape: f32[8,128], index: 3, kind: output, shape index: {}]  }
   0x1   :  { %9 = vsyncpa [#allocation6], 0 }
   0x2   :  { %10 = vsyncpa [#allocation4], 0  ;;  %s390_s12 = smov [#allocation5]   ;;  %s296_s16 = scalar_lea.hbm %s488_s1, 4096 }
   0x3   :  { %s26_s13 = sshll.u32 %s390_s12, 4  ;;  %p297_p0 = scmp.ne.s32.totalorder %s488_s1, %s296_s16  ;;  %s27_s13 = int_to_ptr.vmem [resolvable:$true] %s26_s13 }
   0x4   :  { %p300_p1 = scmp.lt.u32.totalorder %s296_s16, %s488_s1 }
   0x6   :  { %p302_p2 = pnand %p300_p1, %p297_p0 }
   0x8   :  { %305 = shalt.err (!%p302_p2)
}
   0x9   :  { %s306_s21 = scalar_lea.vmem %s27_s13, 4096  ;;  %p311_p4 = scmp.lt.s32.totalorder %s27_s13, %s27_s13 }
   0xa   :  { %p307_p3 = scmp.ne.s32.totalorder %s27_s13, %s306_s21  ;;  %p312_p5 = scmp.lt.s32.totalorder %s306_s21, %s306_s21 }
   0xc   :  { %p313_p6 = por %p312_p5, %p311_p4 }
   0xe   :  { %p314_p7 = pnand %p313_p6, %p307_p3 }
  0x10   :  { %317 = shalt.err (!%p314_p7)
}
  0x11   :  { %s391_s22 = smov 256   ;;  %s392_s23 = smov 16  }
  0x12   :  { %32 = dma.hbm_to_vmem [thread:$0]  %s488_s1, 4096, %s27_s13, [#allocation6], %s391_s22, %s391_s22, %s392_s23  }
  0x13   :  { %s393_s26 = smov [#allocation2]   ;;  %s394_s28 = smov [#allocation7]  }
  0x14   :  { %s17_s27 = sshll.u32 %s393_s26, 4  ;;  %s39_s29 = sshll.u32 %s394_s28, 4  ;;  %s18_s27 = int_to_ptr.vmem [resolvable:$true] %s17_s27  ;;  %s40_s29 = int_to_ptr.vmem [resolvable:$true] %s39_s29 }
  0x15   :  { %s318_s5 = scalar_lea.hbm %s487_s0, 256 }
  0x16   :  { %p319_p8 = scmp.ne.s32.totalorder %s487_s0, %s318_s5  ;;  %p322_p9 = scmp.lt.u32.totalorder %s318_s5, %s487_s0 }
  0x18   :  { %p324_p10 = pnand %p322_p9, %p319_p8 }
  0x1a   :  { %327 = shalt.err (!%p324_p10)
}
  0x1b   :  { %s328_s1 = scalar_lea.vmem %s18_s27, 256  ;;  %p333_p12 = scmp.lt.s32.totalorder %s18_s27, %s18_s27 }
  0x1c   :  { %p329_p11 = scmp.ne.s32.totalorder %s18_s27, %s328_s1  ;;  %p334_p13 = scmp.lt.s32.totalorder %s328_s1, %s328_s1 }
  0x1e   :  { %p335_p0 = por %p334_p13, %p333_p12 }
  0x20   :  { %p336_p1 = pnand %p335_p0, %p329_p11 }
  0x22   :  { %339 = shalt.err (!%p336_p1)
}
  0x23   :  { %20 = dma.hbm_to_vmem [thread:$0]  %s487_s0, 256, %s18_s27, [#allocation3]  }
  0x24   :  { %s340_s14 = scalar_lea.hbm %s489_s2, 16 }
  0x25   :  { %p341_p2 = scmp.ne.s32.totalorder %s489_s2, %s340_s14  ;;  %p344_p3 = scmp.lt.u32.totalorder %s340_s14, %s489_s2 }
  0x27   :  { %p346_p4 = pnand %p344_p3, %p341_p2 }
  0x29   :  { %349 = shalt.err (!%p346_p4)
}
  0x2a   :  { %s350_s19 = scalar_lea.vmem %s40_s29, 16  ;;  %s354_s20 = scalar_lea.vmem %s40_s29, 32 }
  0x2b   :  { %p351_p5 = scmp.ne.s32.totalorder %s40_s29, %s350_s19  ;;  %p355_p6 = scmp.lt.s32.totalorder %s40_s29, %s40_s29 }
  0x2c   :  { %p356_p7 = scmp.lt.s32.totalorder %s354_s20, %s350_s19 }
  0x2e   :  { %p357_p8 = por %p356_p7, %p355_p6 }
  0x30   :  { %p358_p9 = pnand %p357_p8, %p351_p5 }
  0x32   :  { %361 = shalt.err (!%p358_p9)
}
  0x33   :  { %42 = dma.hbm_to_vmem [thread:$0]  %s489_s2, 16, %s40_s29, [#allocation6]  }
  0x34   :  { %384 = dma.done.wait [#allocation3], 256  }
  0x35   :  { %385 = vsyncadd [#allocation3], 4294967040 }
  0x36   :  { %386 = dma.done.wait [#allocation6], 4112  }
  0x37   :  { %387 = vsyncadd [#allocation6], 4294963184  ;;  %vm93_vm0 = vcmask 523264   ;;  %v55_v1 = vld [vmem:[#allocation5 + $0x8] sm:$0xff]  ;;  %v57_v2 = vld [vmem:[#allocation5 + $0x18] sm:$0xff]  ;;  %s395_s2 = smov [#allocation8]  }
  0x38   :  { %vm454_vm1 = vmpackc.low %vm93_vm0, %vm93_vm0  ;;  %v54_v3 = vld [vmem:[#allocation5] sm:$0xff]  ;;  %v250_v4 = vpack.c.bf16 %v57_v2, %v55_v1  ;;  %v56_v5 = vld [vmem:[#allocation5 + $0x10] sm:$0xff]  ;;  %s222_s22 = sshll.u32 %s395_s2, 4  ;;  %s223_s22 = int_to_ptr.vmem [resolvable:$true] %s222_s22 }
  0x39   :  { %v59_v6 = vld [vmem:[#allocation5 + $0x28] sm:$0xff]  ;;  %v61_v7 = vld [vmem:[#allocation5 + $0x38] sm:$0xff]  ;;  %v253_v8 = vpack.c.bf16 %v56_v5, %v54_v3  ;;  %v58_v10 = vld [vmem:[#allocation5 + $0x20] sm:$0xff]  ;;  %s362_s23 = scalar_lea.vmem %s223_s22, 128  ;;  %p367_p11 = scmp.lt.s32.totalorder %s223_s22, %s223_s22 }
  0x3a   :  { %v255_v9 = vpack.c.bf16 %v61_v7, %v59_v6  ;;  %252 = vmatprep.subr.msk.bf16.mxu0 %vm454_vm1, %v250_v4  ;;  %v60_v11 = vld [vmem:[#allocation5 + $0x30] sm:$0xff]  ;;  %v63_v12 = vld [vmem:[#allocation5 + $0x48] sm:$0xff]  ;;  %v65_v13 = vld [vmem:[#allocation5 + $0x58] sm:$0xff]  ;;  %p363_p10 = scmp.ne.s32.totalorder %s223_s22, %s362_s23  ;;  %p368_p12 = scmp.lt.s32.totalorder %s362_s23, %s362_s23 }
  0x3b   :  { %254 = vmatpush1.bf16.xpose.msra.mxu0 %v253_v8  ;;  %v258_v14 = vpack.c.bf16 %v60_v11, %v58_v10  ;;  %v260_v15 = vpack.c.bf16 %v65_v13, %v63_v12  ;;  %v53_v16 = vld [vmem:[#allocation2 + $0x8] sm:$0xff]  ;;  %v62_v17 = vld [vmem:[#allocation5 + $0x40] sm:$0xff]  ;;  %v64_v18 = vld [vmem:[#allocation5 + $0x50] sm:$0xff] }
  0x3c   :  { %257 = vmatprep.subr.msk.bf16.mxu0 %vm454_vm1, %v255_v9  ;;  %249 = vmatprep.mubr.msk.f32.mxu0 %vm93_vm0, %v53_v16  ;;  %v67_v19 = vld [vmem:[#allocation5 + $0x68] sm:$0xff]  ;;  %v69_v20 = vld [vmem:[#allocation5 + $0x78] sm:$0xff]  ;;  %v263_v21 = vpack.c.bf16 %v64_v18, %v62_v17  ;;  %v66_v23 = vld [vmem:[#allocation5 + $0x60] sm:$0xff]  ;;  %p369_p13 = por %p368_p12, %p367_p11 }
  0x3d   :  { %v265_v22 = vpack.c.bf16 %v69_v20, %v67_v19  ;;  %v68_v24 = vld [vmem:[#allocation5 + $0x70] sm:$0xff]  ;;  %v71_v25 = vld [vmem:[#allocation5 + $0x88] sm:$0xff]  ;;  %v73_v26 = vld [vmem:[#allocation5 + $0x98] sm:$0xff] }
  0x3e   :  { %v268_v27 = vpack.c.bf16 %v68_v24, %v66_v23  ;;  %v270_v28 = vpack.c.bf16 %v73_v26, %v71_v25  ;;  %v70_v29 = vld [vmem:[#allocation5 + $0x80] sm:$0xff]  ;;  %v72_v30 = vld [vmem:[#allocation5 + $0x90] sm:$0xff]  ;;  %v75_v31 = vld [vmem:[#allocation5 + $0xa8] sm:$0xff]  ;;  %p370_p0 = pnand %p369_p13, %p363_p10 }
  0x3f   :  { %v77_v32 = vld [vmem:[#allocation5 + $0xb8] sm:$0xff]  ;;  %v273_v33 = vpack.c.bf16 %v72_v30, %v70_v29  ;;  %v74_v35 = vld [vmem:[#allocation5 + $0xa0] sm:$0xff]  ;;  %v76_v36 = vld [vmem:[#allocation5 + $0xb0] sm:$0xff] }
  0x40   :  { %v275_v34 = vpack.c.bf16 %v77_v32, %v75_v31  ;;  %v79_v37 = vld [vmem:[#allocation5 + $0xc8] sm:$0xff]  ;;  %v81_v38 = vld [vmem:[#allocation5 + $0xd8] sm:$0xff]  ;;  %v278_v39 = vpack.c.bf16 %v76_v36, %v74_v35  ;;  %v78_v41 = vld [vmem:[#allocation5 + $0xc0] sm:$0xff] }
  0x41   :  { %v280_v40 = vpack.c.bf16 %v81_v38, %v79_v37  ;;  %v80_v42 = vld [vmem:[#allocation5 + $0xd0] sm:$0xff]  ;;  %v83_v43 = vld [vmem:[#allocation5 + $0xe8] sm:$0xff]  ;;  %v85_v44 = vld [vmem:[#allocation5 + $0xf8] sm:$0xff] }
  0x42   :  { %v283_v45 = vpack.c.bf16 %v80_v42, %v78_v41  ;;  %v285_v46 = vpack.c.bf16 %v85_v44, %v83_v43  ;;  %v82_v47 = vld [vmem:[#allocation5 + $0xe0] sm:$0xff]  ;;  %v84_v48 = vld [vmem:[#allocation5 + $0xf0] sm:$0xff] }
  0x43   :  { %259 = vmatpush1.bf16.xpose.msra.mxu0 %v258_v14  ;;  %v288_v49 = vpack.c.bf16 %v84_v48, %v82_v47  ;;  %v52_v50 = vld [vmem:[#allocation2] sm:$0xff]  ;;  %v232_v51 = vld [vmem:[#allocation7] ss:$0 sm:$0xff] }
  0x44   :  { %262 = vmatprep.subr.msk.bf16.mxu0 %vm454_vm1, %v260_v15 }
  0x4b   :  { %264 = vmatpush1.bf16.xpose.msra.mxu0 %v263_v21 }
  0x4c   :  { %267 = vmatprep.subr.msk.bf16.mxu0 %vm454_vm1, %v265_v22 }
  0x53   :  { %269 = vmatpush1.bf16.xpose.msra.mxu0 %v268_v27 }
  0x54   :  { %272 = vmatprep.subr.msk.bf16.mxu0 %vm454_vm1, %v270_v28 }
  0x5b   :  { %274 = vmatpush1.bf16.xpose.msra.mxu0 %v273_v33 }
  0x5c   :  { %277 = vmatprep.subr.msk.bf16.mxu0 %vm454_vm1, %v275_v34 }
  0x63   :  { %279 = vmatpush1.bf16.xpose.msra.mxu0 %v278_v39 }
  0x64   :  { %282 = vmatprep.subr.msk.bf16.mxu0 %vm454_vm1, %v280_v40 }
  0x6b   :  { %284 = vmatpush1.bf16.xpose.msra.mxu0 %v283_v45 }
  0x6c   :  { %287 = vmatprep.subr.msk.bf16.mxu0 %vm454_vm1, %v285_v46 }
  0x73   :  { %289 = vmatpush1.bf16.xpose.msra.mxu0 %v288_v49 }
  0x7a   :  { %210 = vmatmul.mubr.f32.vlgmr.msra.gmra.mrb[0].mxu0 %v52_v50 }
 0x14d   :  { %v211_v52 = vpop.f32.mrb[0].mxu0 }
 0x14e   :  { %v212_v53 = vadd.f32 %v232_v51, %v211_v52  ;;  %v213_v54 = vpop.f32.mrb[1].mxu0 }
 0x150   :  { %215 = vst [vmem:[#allocation8] sm:$0xff] %v212_v53 }
 0x151   :  { %373 = shalt.err (!%p370_p0)
}
 0x152   :  { %s374_s26 = scalar_lea.hbm %s490_s3, 128 }
 0x153   :  { %p375_p1 = scmp.ne.s32.totalorder %s490_s3, %s374_s26  ;;  %p378_p2 = scmp.lt.u32.totalorder %s374_s26, %s490_s3 }
 0x155   :  { %p380_p3 = pnand %p378_p2, %p375_p1 }
 0x157   :  { %383 = shalt.err (!%p380_p3)
}
 0x158   :  { %225 = dma.vmem_to_hbm [thread:$0]  %s223_s22, 128, %s490_s3, [#allocation4]  }
 0x159   :  { %388 = dma.done.wait [#allocation4], 128  }
 0x15a   :  { %389 = vsyncadd [#allocation4], 4294967168 }
 0x15b   :  { %229 = vsyncpa [#allocation3], 1 }
 0x15c   :  { %230 = vsyncpa [#allocation6], 1 }
 0x15d   :  { %231 = vsyncpa [#allocation4], 1 }

</bundles_post_ra>
